<compile_context>
chip_gen: v7x
topology: tpu7x:2x2x1
jax: 0.10.0
libtpu: 0.0.40
codegen_flags: <defaults>
</compile_context>

<pallas_src>
import jax
import jax.numpy as jnp
from jax.experimental import pallas as pl
from jax.experimental.pallas import tpu as pltpu


def _round_up(x, m):
    return ((x + m - 1) // m) * m


def _pick_tile(p_pad, n_batch, tile_p_max=1024, min_steps=8):
    """Largest multiple-of-128 tile that divides p_pad and still gives at
    least `min_steps` grid steps; fall back to the most-parallel choice."""
    max_t = min(tile_p_max, p_pad)
    cands = [t for t in range(128, max_t + 1, 128) if p_pad % t == 0]
    good = [t for t in cands if n_batch * (p_pad // t) >= min_steps]
    return max(good) if good else min(cands)


def _make_kernel(head_slices, cin, compute_dtype, out_dtype):
    """Build the fused kernel. head_slices = [(cout_off, cout, hid_off, hid)]."""
    n_heads = len(head_slices)
    kp = cin + 1  # extra always-one channel carries b1 through the MXU

    def kernel(x_ref, w1t_ref, w2t_ref, b2_ref, *rest):
        o_refs = rest[:n_heads]
        xaug_ref = rest[n_heads]                      # (cin+1, tp) scratch
        tp = x_ref.shape[-1]

        # Stage x (cast to compute dtype) plus the bias channel.  The cast is
        # needed anyway for bf16 matmuls; staging it here lets b1 ride through
        # the (underfilled) MXU K dim instead of a VPU pass over h.
        xaug_ref[0:cin, :] = x_ref[...].astype(compute_dtype)
        xaug_ref[cin:kp, :] = jnp.ones((1, tp), compute_dtype)

        # First 1x1 conv for every head in one wide matmul (f32 accumulate),
        # then ReLU + cast fused into a single expression -> h exists once,
        # already in compute dtype.
        h = jnp.dot(w1t_ref[...], xaug_ref[...],
                    preferred_element_type=jnp.float32)
        h = jnp.maximum(h, 0.0).astype(compute_dtype)

        # Second 1x1 conv: block-diagonal weight covers every head at once.
        y = jnp.dot(w2t_ref[...], h, preferred_element_type=jnp.float32)
        y = y + b2_ref[...]                           # small: cout_total rows

        # Lane-dense per-head stores (static row slices of y).
        for idx, (co, cn, _, _) in enumerate(head_slices):
            o_refs[idx][...] = y[co:co + cn, :].astype(out_dtype)

    return kernel


def pack_sep_head_params(params, compute_dtype=jnp.bfloat16):
    """Fuse per-head parameters.

    Returns (w1t, w2t, b2, head_slices) where
      w1t : (hid_total, Cin+1)  first-conv weights, b1 folded into column Cin
      w2t : (cout_total, hid_total)  block-diagonal second-conv weights
      b2  : (cout_total, 1) f32
      head_slices : [(cout_off, cout, hid_off, hid)] in head order.
    """
    head_names = list(params.keys())
    cin = params[head_names[0]][0].shape[0]

    w1_rows, b2_parts, head_slices = [], [], []
    hid_off = cout_off = 0
    for head in head_names:
        w1, b1, w2, b2 = params[head]
        chid, cout = w1.shape[1], w2.shape[1]
        # (chid, Cin+1): weightsᵀ with bias as the extra input-channel column.
        w1_rows.append(jnp.concatenate([w1.T, b1.reshape(chid, 1)], axis=1))
        b2_parts.append(b2.reshape(cout, 1))
        head_slices.append((cout_off, cout, hid_off, chid))
        hid_off += chid
        cout_off += cout
    hid_total, cout_total = hid_off, cout_off

    w1t = jnp.concatenate(w1_rows, axis=0).astype(compute_dtype)
    b2c = jnp.concatenate(b2_parts, axis=0).astype(jnp.float32)

    w2t = jnp.zeros((cout_total, hid_total), jnp.float32)
    for head, (co, cn, ho, hn) in zip(head_names, head_slices):
        w2 = params[head][2]
        w2t = w2t.at[co:co + cn, ho:ho + hn].set(w2.T)
    w2t = w2t.astype(compute_dtype)
    return w1t, w2t, b2c, head_slices


def sep_head_forward(x_nchw, params, *, tile_p_max=1024, min_grid_steps=8,
                     compute_dtype=jnp.bfloat16, out_dtype=jnp.float32):
    """Equivalent of SepHead.forward: returns dict head -> NCHW output."""
    N, Cin, H, W = x_nchw.shape
    P = H * W
    head_names = list(params.keys())
    w1t, w2t, b2c, head_slices = pack_sep_head_params(params, compute_dtype)
    hid_total = w1t.shape[0]
    cout_total = w2t.shape[0]

    # NCHW is already channels-first per batch element -> free reshape; no
    # wrapper-side dtype cast (the cast happens inside the kernel).
    x3 = x_nchw.reshape(N, Cin, P)

    # Lane-dense pixel tiles.  Only pad when P is not a multiple of 128;
    # otherwise the tile divides P exactly and no pad/slice copy is needed.
    P_pad = _round_up(P, 128)
    if P_pad != P:
        x3 = jnp.pad(x3, ((0, 0), (0, 0), (0, P_pad - P)))
    tp = _pick_tile(P_pad, N, tile_p_max, min_grid_steps)
    grid = (P_pad // tp, N)          # pixel tiles leading -> megacore balance

    kernel = _make_kernel(head_slices, Cin, compute_dtype, out_dtype)

    # Honest advisory cost (block-diagonal zeros not counted as FLOPs).
    flops = 2 * N * P_pad * ((Cin + 1) * hid_total
                             + sum(hn * cn for (_, cn, _, hn) in head_slices))
    out_itemsize = jnp.dtype(out_dtype).itemsize
    bytes_accessed = (x3.size * x3.dtype.itemsize
                      + w1t.size * w1t.dtype.itemsize
                      + w2t.size * w2t.dtype.itemsize
                      + b2c.size * 4
                      + N * cout_total * P_pad * out_itemsize)

    outs = pl.pallas_call(
        kernel,
        out_shape=tuple(jax.ShapeDtypeStruct((N, cn, P_pad), out_dtype)
                        for (_, cn, _, _) in head_slices),
        grid_spec=pltpu.PrefetchScalarGridSpec(
            num_scalar_prefetch=0,
            grid=grid,
            in_specs=[
                # x tile: (Cin, tp), batch dim squeezed; stays in input dtype.
                pl.BlockSpec((None, Cin, tp), lambda p, n: (n, 0, p)),
                # Fused weights/biases: constant index maps -> VMEM-resident.
                pl.BlockSpec((hid_total, Cin + 1), lambda p, n: (0, 0)),
                pl.BlockSpec((cout_total, hid_total), lambda p, n: (0, 0)),
                pl.BlockSpec((cout_total, 1), lambda p, n: (0, 0)),
            ],
            out_specs=tuple(pl.BlockSpec((None, cn, tp), lambda p, n: (n, 0, p))
                            for (_, cn, _, _) in head_slices),
            scratch_shapes=[pltpu.VMEM((Cin + 1, tp), compute_dtype)],
        ),
        compiler_params=pltpu.CompilerParams(
            dimension_semantics=("parallel", "parallel")),
        cost_estimate=pl.CostEstimate(flops=flops, transcendentals=0,
                                      bytes_accessed=bytes_accessed),
    )(x3, w1t, w2t, b2c)

    ret = {}
    for head, (_, cn, _, _), y in zip(head_names, head_slices, outs):
        if P_pad != P:
            y = y[:, :, :P]
        ret[head] = y.reshape(N, cn, H, W)
    return ret


def init_sep_head_params(key, in_channels, heads, head_conv=64,
                         init_bias=-2.19):
    """Deterministic parameter init mirroring SepHead.__init__ shapes.

    Each head has num_conv=2: Conv(in->head_conv)+ReLU, Conv(head_conv->classes).
    'hm' heads get final bias = init_bias; others get kaiming-normal-ish
    weights. First-conv biases are small random (like PyTorch's default).
    """
    params = {}
    for head, (classes, num_conv) in heads.items():
        assert num_conv == 2, "demo covers the common num_conv=2 configuration"
        key, k1, k2, k3 = jax.random.split(key, 4)
        w1 = jax.random.normal(k1, (in_channels, head_conv), jnp.float32) * (
            jnp.sqrt(2.0 / head_conv))
        b1 = jax.random.uniform(k3, (1, head_conv), jnp.float32, -0.1, 0.1)
        w2 = jax.random.normal(k2, (head_conv, classes), jnp.float32) * (
            jnp.sqrt(2.0 / classes))
        if 'hm' in head:
            b2 = jnp.full((1, classes), init_bias, jnp.float32)
        else:
            b2 = jnp.zeros((1, classes), jnp.float32)
        params[head] = (w1, b1, w2, b2)
    return params


if __name__ == "__main__":
    # Small, deterministic example consistent with SepHead's forward.
    N, Cin, H, W = 2, 4, 16, 16
    head_conv = 32
    heads = {            # head_name: (classes, num_conv)
        "hm": (2, 2),
        "reg": (2, 2),
        "dim": (3, 2),
    }

    key = jax.random.PRNGKey(0)
    key, kx = jax.random.split(key)
    x = jax.random.normal(kx, (N, Cin, H, W), jnp.float32)
    params = init_sep_head_params(key, Cin, heads, head_conv=head_conv)

    # Pure-JAX reference of the same per-head math (f32).
    x_flat = jnp.transpose(x, (0, 2, 3, 1)).reshape(N * H * W, Cin)
    refs = {}
    for head, (w1, b1, w2, b2) in params.items():
        r = jnp.maximum(x_flat @ w1 + b1, 0.0) @ w2 + b2
        refs[head] = r.reshape(N, H, W, w2.shape[1]).transpose(0, 3, 1, 2)

    # Exact-precision path (f32 compute everywhere): tight tolerance check.
    out_f32 = sep_head_forward(x, params, compute_dtype=jnp.float32)
    out_f32 = jax.tree_util.tree_map(jax.block_until_ready, out_f32)
    for head, (classes, _) in heads.items():
        assert out_f32[head].shape == (N, classes, H, W)
        assert jnp.allclose(out_f32[head], refs[head], atol=1e-4, rtol=1e-4), head

    # Bandwidth-optimized path (bf16 weights + in-kernel bf16 cast of x,
    # f32 accumulation, f32 output) - the default.
    out_bf16 = sep_head_forward(x, params)
    out_bf16 = jax.tree_util.tree_map(jax.block_until_ready, out_bf16)
    for head in heads:
        assert out_bf16[head].shape == (N, heads[head][0], H, W)
        assert jnp.allclose(out_bf16[head], refs[head], atol=1e-1, rtol=5e-2), head

    print("KERNEL_OK")
</pallas_src>

<mosaic_0001>
module attributes {stable_mosaic.version = 11 : i64} {
  func.func @kernel(%arg0: i32, %arg1: i32, %arg2: memref<1x4x128xf32, #tpu.memory_space<vmem>>, %arg3: memref<96x5xf32, #tpu.memory_space<vmem>>, %arg4: memref<7x96xf32, #tpu.memory_space<vmem>>, %arg5: memref<7x1xf32, #tpu.memory_space<vmem>>, %arg6: memref<1x2x128xf32, #tpu.memory_space<vmem>>, %arg7: memref<1x2x128xf32, #tpu.memory_space<vmem>>, %arg8: memref<1x3x128xf32, #tpu.memory_space<vmem>>, %arg9: memref<5x128xf32, #tpu.memory_space<vmem>>) attributes {dimension_semantics = [#tpu.dimension_semantics<parallel>, #tpu.dimension_semantics<parallel>], iteration_bounds = array<i64: 2, 2>, scalar_prefetch = 0 : i64, scratch_operands = 1 : i64, tpu.core_type = #tpu.core_type<tc>, window_params = [{transform_indices = @transform_0, window_bounds = array<i64: 1, 4, 128>}, {pipeline_mode = #tpu.pipeline_mode<synchronous>, transform_indices = @transform_1, window_bounds = array<i64: 96, 5>}, {pipeline_mode = #tpu.pipeline_mode<synchronous>, transform_indices = @transform_2, window_bounds = array<i64: 7, 96>}, {pipeline_mode = #tpu.pipeline_mode<synchronous>, transform_indices = @transform_3, window_bounds = array<i64: 7, 1>}, {transform_indices = @transform_4, window_bounds = array<i64: 1, 2, 128>}, {transform_indices = @transform_5, window_bounds = array<i64: 1, 2, 128>}, {transform_indices = @transform_6, window_bounds = array<i64: 1, 3, 128>}]} {
    %c0 = arith.constant 0 : index
    %c0_0 = arith.constant 0 : index
    %c0_1 = arith.constant 0 : index
    %0 = vector.load %arg2[%c0, %c0_0, %c0_1] : memref<1x4x128xf32, #tpu.memory_space<vmem>>, vector<1x4x128xf32>
    %1 = vector.shape_cast %0 : vector<1x4x128xf32> to vector<4x128xf32>
    %c0_2 = arith.constant 0 : index
    %c0_3 = arith.constant 0 : index
    %2 = vector.load %arg9[%c0_2, %c0_3] : memref<5x128xf32, #tpu.memory_space<vmem>>, vector<4x128xf32>
    tpu.vector_store %arg9[%c0_2, %c0_3], %1 {strides = array<i32>} : memref<5x128xf32, #tpu.memory_space<vmem>>, vector<4x128xf32>,
    %cst = arith.constant 1.000000e+00 : f32
    %3 = vector.broadcast %cst : f32 to vector<1x128xf32>
    %c4 = arith.constant 4 : index
    %c0_4 = arith.constant 0 : index
    %4 = vector.load %arg9[%c4, %c0_4] : memref<5x128xf32, #tpu.memory_space<vmem>>, vector<1x128xf32>
    tpu.vector_store %arg9[%c4, %c0_4], %3 {strides = array<i32>} : memref<5x128xf32, #tpu.memory_space<vmem>>, vector<1x128xf32>,
    %c0_5 = arith.constant 0 : index
    %c0_6 = arith.constant 0 : index
    %5 = vector.load %arg3[%c0_5, %c0_6] : memref<96x5xf32, #tpu.memory_space<vmem>>, vector<96x5xf32>
    %c0_7 = arith.constant 0 : index
    %c0_8 = arith.constant 0 : index
    %6 = vector.load %arg9[%c0_7, %c0_8] : memref<5x128xf32, #tpu.memory_space<vmem>>, vector<5x128xf32>
    %cst_9 = arith.constant dense<0.000000e+00> : vector<96x128xf32>
    %7 = tpu.matmul %5, %6, %cst_9 {dimension_numbers = #tpu.dot_dimension_numbers<[1], [0], [0], [1], [0, 0, 1, 1], [], []>} : vector<96x5xf32>, vector<5x128xf32>, vector<96x128xf32> -> vector<96x128xf32>
    %cst_10 = arith.constant 0.000000e+00 : f32
    %8 = vector.broadcast %cst_10 : f32 to vector<96x128xf32>
    %9 = arith.maximumf %7, %8 : vector<96x128xf32>
    %c0_11 = arith.constant 0 : index
    %c0_12 = arith.constant 0 : index
    %10 = vector.load %arg4[%c0_11, %c0_12] : memref<7x96xf32, #tpu.memory_space<vmem>>, vector<7x96xf32>
    %cst_13 = arith.constant dense<0.000000e+00> : vector<7x128xf32>
    %11 = tpu.matmul %10, %9, %cst_13 {dimension_numbers = #tpu.dot_dimension_numbers<[1], [0], [0], [1], [0, 0, 1, 1], [], []>} : vector<7x96xf32>, vector<96x128xf32>, vector<7x128xf32> -> vector<7x128xf32>
    %c0_14 = arith.constant 0 : index
    %c0_15 = arith.constant 0 : index
    %12 = vector.load %arg5[%c0_14, %c0_15] : memref<7x1xf32, #tpu.memory_space<vmem>>, vector<7x1xf32>
    %13 = vector.broadcast %12 : vector<7x1xf32> to vector<7x128xf32>
    %14 = arith.addf %11, %13 : vector<7x128xf32>
    %15 = vector.extract_strided_slice %14 {offsets = [0, 0], sizes = [2, 128], strides = [1, 1]} : vector<7x128xf32> to vector<2x128xf32>
    %c0_16 = arith.constant 0 : index
    %c0_17 = arith.constant 0 : index
    %c0_18 = arith.constant 0 : index
    %16 = vector.load %arg6[%c0_16, %c0_17, %c0_18] : memref<1x2x128xf32, #tpu.memory_space<vmem>>, vector<1x2x128xf32>
    %17 = vector.shape_cast %16 : vector<1x2x128xf32> to vector<2x128xf32>
    %18 = vector.shape_cast %15 : vector<2x128xf32> to vector<1x2x128xf32>
    tpu.vector_store %arg6[%c0_16, %c0_17, %c0_18], %18 {strides = array<i32>} : memref<1x2x128xf32, #tpu.memory_space<vmem>>, vector<1x2x128xf32>,
    %19 = vector.extract_strided_slice %14 {offsets = [2, 0], sizes = [2, 128], strides = [1, 1]} : vector<7x128xf32> to vector<2x128xf32>
    %c0_19 = arith.constant 0 : index
    %c0_20 = arith.constant 0 : index
    %c0_21 = arith.constant 0 : index
    %20 = vector.load %arg7[%c0_19, %c0_20, %c0_21] : memref<1x2x128xf32, #tpu.memory_space<vmem>>, vector<1x2x128xf32>
    %21 = vector.shape_cast %20 : vector<1x2x128xf32> to vector<2x128xf32>
    %22 = vector.shape_cast %19 : vector<2x128xf32> to vector<1x2x128xf32>
    tpu.vector_store %arg7[%c0_19, %c0_20, %c0_21], %22 {strides = array<i32>} : memref<1x2x128xf32, #tpu.memory_space<vmem>>, vector<1x2x128xf32>,
    %23 = vector.extract_strided_slice %14 {offsets = [4, 0], sizes = [3, 128], strides = [1, 1]} : vector<7x128xf32> to vector<3x128xf32>
    %c0_22 = arith.constant 0 : index
    %c0_23 = arith.constant 0 : index
    %c0_24 = arith.constant 0 : index
    %24 = vector.load %arg8[%c0_22, %c0_23, %c0_24] : memref<1x3x128xf32, #tpu.memory_space<vmem>>, vector<1x3x128xf32>
    %25 = vector.shape_cast %24 : vector<1x3x128xf32> to vector<3x128xf32>
    %26 = vector.shape_cast %23 : vector<3x128xf32> to vector<1x3x128xf32>
    tpu.vector_store %arg8[%c0_22, %c0_23, %c0_24], %26 {strides = array<i32>} : memref<1x3x128xf32, #tpu.memory_space<vmem>>, vector<1x3x128xf32>,
    return
  }
  func.func @transform_0(%arg0: i32, %arg1: i32) -> (i32, i32, i32) {
    %c0_i32 = arith.constant 0 : i32
    %c0_i32_0 = arith.constant 0 : i32
    return %arg1, %c0_i32, %arg0 : i32, i32, i32
  }
  func.func @transform_1(%arg0: i32, %arg1: i32) -> (i32, i32) {
    %c0_i32 = arith.constant 0 : i32
    %c0_i32_0 = arith.constant 0 : i32
    %c0_i32_1 = arith.constant 0 : i32
    return %c0_i32, %c0_i32_0 : i32, i32
  }
  func.func @transform_2(%arg0: i32, %arg1: i32) -> (i32, i32) {
    %c0_i32 = arith.constant 0 : i32
    %c0_i32_0 = arith.constant 0 : i32
    %c0_i32_1 = arith.constant 0 : i32
    return %c0_i32, %c0_i32_0 : i32, i32
  }
  func.func @transform_3(%arg0: i32, %arg1: i32) -> (i32, i32) {
    %c0_i32 = arith.constant 0 : i32
    %c0_i32_0 = arith.constant 0 : i32
    %c0_i32_1 = arith.constant 0 : i32
    return %c0_i32, %c0_i32_0 : i32, i32
  }
  func.func @transform_4(%arg0: i32, %arg1: i32) -> (i32, i32, i32) {
    %c0_i32 = arith.constant 0 : i32
    %c0_i32_0 = arith.constant 0 : i32
    return %arg1, %c0_i32, %arg0 : i32, i32, i32
  }
  func.func @transform_5(%arg0: i32, %arg1: i32) -> (i32, i32, i32) {
    %c0_i32 = arith.constant 0 : i32
    %c0_i32_0 = arith.constant 0 : i32
    return %arg1, %c0_i32, %arg0 : i32, i32, i32
  }
  func.func @transform_6(%arg0: i32, %arg1: i32) -> (i32, i32, i32) {
    %c0_i32 = arith.constant 0 : i32
    %c0_i32_0 = arith.constant 0 : i32
    return %arg1, %c0_i32, %arg0 : i32, i32, i32
  }
}

</mosaic_0001>

<bundles_post_ra>
// kernel: tpu_custom_call.1
= control target key start
LH: loop header
LB: loop body
LE: loop exit
PB: predicated region body
PF: predicated region fallthrough
CT: control target
= control target key end

     0   :  { %s1391_s0 = inlined_call_operand.vmem [shape: f32[2,4,256], index: 0, kind: input, shape index: {}]   ;;  %s1392_s1 = inlined_call_operand.vmem [shape: f32[96,5], index: 1, kind: input, shape index: {}]   ;;  %s1393_s2 = inlined_call_operand.vmem [shape: f32[7,96], index: 2, kind: input, shape index: {}]   ;;  %s1394_s3 = inlined_call_operand.vmem [shape: f32[7,1], index: 3, kind: input, shape index: {}]   ;;  %s1395_s4 = inlined_call_operand.hbm [shape: f32[2,2,256], index: 4, kind: output, shape index: {0}]   ;;  %s1396_s5 = inlined_call_operand.hbm [shape: f32[2,2,256], index: 5, kind: output, shape index: {1}]   ;;  %s1397_s6 = inlined_call_operand.vmem [shape: f32[2,3,256], index: 6, kind: output, shape index: {2}]  }
   0x1   :  { %1399 = sst [smem:[#allocation10_spill]] %s1391_s0 }
   0x2   :  { %1400 = sst [smem:[#allocation11_spill]] %s1392_s1 }
   0x3   :  { %1401 = sst [smem:[#allocation12_spill]] %s1393_s2 }
   0x4   :  { %1402 = sst [smem:[#allocation13_spill]] %s1394_s3 }
   0x5   :  { %12 = vsyncpa [#allocation4], 0 }
   0x6   :  { %14 = vsyncpa [#allocation4 + $0x1], 0 }
   0x7   :  { %15 = vsyncpa [#allocation6], 0 }
   0x8   :  { %17 = vsyncpa [#allocation6 + $0x1], 0  ;;  %s1157_s21 = smov 0   ;;  %s1159_s22 = smov 0  }
   0x9   :  { %s1161_s23 = smov 0   ;;  %s1163_s24 = smov 0  }
   0xa   :  { %s1165_s25 = smov 0   ;;  %s1167_s26 = smov 0  }
   0xb   :  { %s1169_s27 = smov 0   ;;  %s1171_s28 = smov 0  }
   0xc LB: > { %s781_s29 = sadd.s32 4294967295, %s1113_s28   ;;  %s782_s30 = sadd.s32 4294967294, %s1113_s28   ;;  %s1113_s28 = sphi %s1171_s28, %s23_s28   ;;  %s1109_s27 = sphi %s1169_s27, %s1417_s27   ;;  %s1105_s26 = sphi %s1167_s26, %s1416_s26   ;;  %s1101_s25 = sphi %s1165_s25, %s1415_s25   ;;  %s1097_s24 = sphi %s1163_s24, %s1414_s24   ;;  %s1093_s23 = sphi %s1161_s23, %s1413_s23   ;;  %s1089_s22 = sphi %s1159_s22, %s1412_s22   ;;  %s1085_s21 = sphi %s1157_s21, %s1411_s21  }
   0xd   : > { %s32_s7 = sadd.s32 1, %s1105_s26  ;;  %s35_s8 = sadd.s32 1, %s1109_s27 }
   0xe   : > { %p33_p0 = scmp.ge.s32.totalorder %s32_s7, 2  ;;  %p145_p1 = scmp.ne.s32.totalorder %s1093_s23, %s1089_s22 }
   0xf   : > { %p146_p2 = scmp.eq.s32.totalorder %s781_s29, 3  ;;  %p151_p5 = scmp.ne.s32.totalorder %s1089_s22, %s1085_s21 }
  0x10   : > { %s1419_s7 = smov (%p33_p0, %s32_s7), 0  ;;  %s1421_s8 = smov (!%p33_p0, %s35_s8), %s1109_s27 }
  0x11   : > { %s130_s9 = ssub.s32 %s1105_s26, %s1419_s7  ;;  %p1208_p3 = por %p146_p2, %p145_p1 }
  0x12   : > { %p37_p4 = scmp.ge.s32.totalorder %s1421_s8, 2  ;;  %p152_p6 = scmp.eq.s32.totalorder %s782_s30, 3 }
  0x13   : > { %p785_p7 = scmp.ge.s32.totalorder %s1113_s28, 1  ;;  %p246_p9 = scmp.lt.s32.totalorder %s1113_s28, 5 }
  0x14   : > { %s1423_s8 = smov (%p37_p4, %s1421_s8), 0  ;;  %p1217_p8 = por %p152_p6, %p151_p5 }
  0x15   : > { %1404 = sst [smem:[#allocation9_spill]] %s1423_s8  ;;  %s131_s12 = ssub.s32 %s1109_s27, %s1423_s8 }
  0x16   : > { %s135_s13 = sadd.s32 1, %s1093_s23  ;;  %s132_s14 = sor.u32 %s131_s12, %s130_s9 }
  0x17   : > { %p247_p10 = pnand %p785_p7, %p246_p9  ;;  %p133_p11 = scmp.eq.s32.totalorder %s132_s14, 0 }
  0x18   : > { %p292_p12 = scmp.lt.s32.totalorder (!%p247_p10), %s1097_s24, 1  ;;  %p294_p13 = scmp.lt.s32.totalorder (!%p247_p10), %s1101_s25, 1  ;;  %vm324_vm0 = vcmask (!%p247_p10), 39936   ;;  %v1115_v1 = vmov (!%p247_p10), 1.0   ;;  %vm361_vm1 = vcmask (!%p247_p10), 1044480   ;;  %v1116_v15 = vmov (!%p247_p10), 0.0|0.0  }
  0x19   : > { %s1226_s15 = scalar_select %p133_p11, %s1093_s23, %s135_s13  }
  0x1a   : > { %250 = sbr.rel (%p247_p10) target bundleno = 542 (0x21e), region = 36  ;;  %s1406_s1 = sld [smem:[#allocation11_spill]] (!%p247_p10)  ;;  %310 = vst [vmem:[#allocation2 + $0x4] sm:$0x1] (!%p247_p10), %v1115_v1  ;;  %887 = vmatprep.subr.bf16.mxu1 (!%p247_p10), %v1116_v15  ;;  %vm1117_vm2 = vmmov (!%p247_p10), 0   ;;  %v1118_v16 = vmov (!%p247_p10), 0.0  }
  0x1b   : > { %s1407_s0 = sld [smem:[#allocation10_spill]] (!%p247_p10)  ;;  %884 = vmatprep.mubr.msk.f32.mxu1 (!%p247_p10), %vm1117_vm2, %v1118_v16  ;;  %s1408_s3 = sld [smem:[#allocation13_spill]] (!%p247_p10)  ;;  %v1119_v18 = vmov (!%p247_p10), 0   ;;  %vm509_vm3 = vcmask (!%p247_p10), 785408  }
  0x1c   : > { %986 = vset.pattern.permute.xlu0 (!%p247_p10), %v1119_v18  ;;  %s1409_s2 = sld [smem:[#allocation12_spill]] (!%p247_p10)  ;;  %s808_s14 = sshll.u32 (!%p247_p10), %s1097_s24, 1 }
  0x1d   : > { %s611_s17 = sadd.s32 (!%p247_p10), %s1101_s25, %s808_s14  ;;  %s1120_s8 = smov (!%p247_p10), [#allocation3]  }
  0x20   : > { %v311_v0 = vld [vmem:[%s1406_s1] sm:$0xff] (!%p247_p10)  ;;  %v312_v4 = vld [vmem:[%s1406_s1 + $0x8] sm:$0xff] (!%p247_p10)  ;;  %v313_v5 = vld [vmem:[%s1406_s1 + $0x10] sm:$0xff] (!%p247_p10) }
  0x21   : > { %842 = vmatprep.mubr.msk.f32.mxu0 %vm324_vm0, %v311_v0  ;;  %s293_s18 = scalar_select %p292_p12, %s1097_s24, 1  ;;  %v314_v6 = vld [vmem:[%s1406_s1 + $0x18] sm:$0xff]  ;;  %v315_v7 = vld [vmem:[%s1406_s1 + $0x20] sm:$0xff]  ;;  %v316_v8 = vld [vmem:[%s1406_s1 + $0x28] sm:$0xff] }
  0x22   : > { %s295_s19 = scalar_select %p294_p13, %s1101_s25, 1  ;;  %v317_v9 = vld [vmem:[%s1406_s1 + $0x30] sm:$0xff]  ;;  %v318_v10 = vld [vmem:[%s1406_s1 + $0x38] sm:$0xff]  ;;  %v319_v11 = vld [vmem:[%s1406_s1 + $0x40] sm:$0xff] }
  0x23   : > { %s788_s20 = sshll.u32 %s293_s18, 1  ;;  %v320_v12 = vld [vmem:[%s1406_s1 + $0x48] sm:$0xff]  ;;  %v321_v13 = vld [vmem:[%s1406_s1 + $0x50] sm:$0xff]  ;;  %v322_v14 = vld [vmem:[%s1406_s1 + $0x58] sm:$0xff]  ;;  %s809_s18 = sshll.u32 %s611_s17, 5 }
  0x24   : > { %s1236_s29 = sadd.s32 %s788_s20, %s295_s19  ;;  %v503_v17 = vld [vmem:[%s1408_s3] sm:$0x7f]  ;;  %s1308_s24 = scalar_lea.hbm %s1395_s4, %s809_s18 }
  0x25   : > { %s789_s30 = sshll.u32 %s1236_s29, 2  ;;  %506 = vperm.xlu0 %986, %v503_v17   ;;  %v502_v49 = vld [vmem:[%s1409_s2] sm:$0x7f]  ;;  %s991_s29 = sshll.u32 %s1120_s8, 4  ;;  %s992_s29 = int_to_ptr.vmem [resolvable:$false] %s991_s29 }
  0x26   : > { %s299_s13 = scalar_lea.vmem %s1407_s0, %s789_s30  ;;  %s307_s3 = scalar_lea.vmem %s1397_s6, %s789_s30 }
  0x27   : > { %v308_v2 = vld [vmem:[%s299_s13] sm:$0xf]  ;;  %s1295_s13 = sand.u32 1, %s1089_s22   ;;  %s1315_s0 = scalar_lea.hbm %s1396_s5, %s809_s18 }
  0x28   : > { %309 = vst [vmem:[#allocation2] sm:$0xf] %v308_v2  ;;  %s786_s16 = sshll.u32 %s1295_s13, 1  ;;  %s587_s1 = scalar_lea.sflag [#allocation4], %s1295_s13 }
  0x29   : > { %s274_s19 = scalar_lea.vmem [#allocation3], %s786_s16  ;;  %s281_s9 = scalar_lea.vmem [#allocation5], %s786_s16 }
  0x2a   : > { %s615_s20 = sshll.u32 %s274_s19, 4  ;;  %s630_s12 = sshll.u32 %s281_s9, 4  ;;  %s1310_s20 = int_to_ptr.vmem [resolvable:$true] %s615_s20  ;;  %s1317_s12 = int_to_ptr.vmem [resolvable:$true] %s630_s12 }
  0x2b   : > { %s987_s2 = scalar_lea.vmem %s1310_s20, 32  ;;  %s993_s30 = scalar_lea.vmem %s992_s29, 64 }
  0x2c   : > { %p988_p0 = scmp.ne.s32.totalorder %s1310_s20, %s987_s2  ;;  %p994_p4 = scmp.lt.s32.totalorder %s1310_s20, %s992_s29 }
  0x2d   : > { %p995_p5 = scmp.lt.s32.totalorder %s993_s30, %s987_s2 }
  0x2e   : > { %p989_p1 = pnand %p988_p0, %p1208_p3 }
  0x2f   : > { %v323_v3 = vld [vmem:[#allocation2] sm:$0x1f]  ;;  %p996_p6 = por %p995_p5, %p994_p4 }
  0x30   : > { %840 = vmatprep.subr.msk.mxu0 %vm361_vm1, %v323_v3  ;;  %p990_p2 = pneg %p989_p1 }
  0x31   : > { %841 = vmatpush3.msk.msra.mxu0 %vm361_vm1, %v323_v3 }
  0x32   : > { %843 = vmatmul.mubr.msk.f32.vlgmr.msra.gmra.mrb[0].mxu0 %vm324_vm0, %v312_v4  ;;  %p997_p7 = pnand %p996_p6, %p990_p2 }
  0x33   : > { %845 = vmatprep.mubr.msk.f32.mxu0 %vm324_vm0, %v313_v5 }
  0x36   : > { %846 = vmatmul.mubr.msk.f32.gmra.mrb[2].mxu0 %vm324_vm0, %v314_v6 }
  0x37   : > { %848 = vmatprep.mubr.msk.f32.mxu0 %vm324_vm0, %v315_v7 }
  0x3a   : > { %849 = vmatmul.mubr.msk.f32.gmra.mrb[4].mxu0 %vm324_vm0, %v316_v8 }
  0x3b   : > { %851 = vmatprep.mubr.msk.f32.mxu0 %vm324_vm0, %v317_v9 }
  0x3e   : > { %852 = vmatmul.mubr.msk.f32.gmra.mrb[6].mxu0 %vm324_vm0, %v318_v10 }
  0x3f   : > { %854 = vmatprep.mubr.msk.f32.mxu0 %vm324_vm0, %v319_v11 }
  0x42   : > { %855 = vmatmul.mubr.msk.f32.gmra.mrb[8].mxu0 %vm324_vm0, %v320_v12 }
  0x43   : > { %857 = vmatprep.mubr.msk.f32.mxu0 %vm324_vm0, %v321_v13 }
  0x46   : > { %858 = vmatmul.mubr.msk.f32.gmra.mrb[10].mxu0 %vm324_vm0, %v322_v14 }
  0xa4   : > { %v507_v50 = vpop.permute.xlu0 %506 }
 0x105   : > { %v844_v19 = vpop.f32.mrb[0].mxu0 }
 0x106   : > { %v491_v20 = vmax.f32 %v844_v19, 0.0  ;;  %v431_v21 = vpop.f32.mrb[1].mxu0 }
 0x107   : > { %v490_v22 = vmax.f32 %v431_v21, 0.0 }
 0x109   : > { %v847_v23 = vpop.f32.mrb[2].mxu0  ;;  %v888_v24 = vpack.c.bf16 %v491_v20, %v490_v22 }
 0x10a   : > { %v493_v25 = vmax.f32 %v847_v23, 0.0  ;;  %v441_v26 = vpop.f32.mrb[3].mxu0 }
 0x10b   : > { %v492_v27 = vmax.f32 %v441_v26, 0.0  ;;  %889 = vmatpush3.bf16.msra.mxu1 %v888_v24 }
 0x10c   : > { %890 = vmatprep.subr.bf16.mxu1 %v1116_v15 }
 0x10d   : > { %v891_v28 = vpack.c.bf16 %v493_v25, %v492_v27  ;;  %v850_v29 = vpop.f32.mrb[4].mxu0 }
 0x10e   : > { %v495_v30 = vmax.f32 %v850_v29, 0.0  ;;  %v451_v31 = vpop.f32.mrb[5].mxu0 }
 0x10f   : > { %v494_v32 = vmax.f32 %v451_v31, 0.0  ;;  %892 = vmatpush3.bf16.msra.mxu1 %v891_v28 }
 0x110   : > { %893 = vmatprep.subr.bf16.mxu1 %v1116_v15 }
 0x111   : > { %v894_v33 = vpack.c.bf16 %v495_v30, %v494_v32  ;;  %v853_v34 = vpop.f32.mrb[6].mxu0 }
 0x112   : > { %v497_v35 = vmax.f32 %v853_v34, 0.0  ;;  %v461_v36 = vpop.f32.mrb[7].mxu0 }
 0x113   : > { %v496_v37 = vmax.f32 %v461_v36, 0.0  ;;  %895 = vmatpush3.bf16.msra.mxu1 %v894_v33 }
 0x114   : > { %896 = vmatprep.subr.bf16.mxu1 %v1116_v15 }
 0x115   : > { %v897_v38 = vpack.c.bf16 %v497_v35, %v496_v37  ;;  %v856_v39 = vpop.f32.mrb[8].mxu0 }
 0x116   : > { %v499_v40 = vmax.f32 %v856_v39, 0.0  ;;  %v471_v41 = vpop.f32.mrb[9].mxu0 }
 0x117   : > { %v498_v42 = vmax.f32 %v471_v41, 0.0  ;;  %898 = vmatpush3.bf16.msra.mxu1 %v897_v38 }
 0x118   : > { %899 = vmatprep.subr.bf16.mxu1 %v1116_v15 }
 0x119   : > { %v900_v43 = vpack.c.bf16 %v499_v40, %v498_v42  ;;  %v859_v44 = vpop.f32.mrb[10].mxu0 }
 0x11a   : > { %v501_v45 = vmax.f32 %v859_v44, 0.0  ;;  %v481_v46 = vpop.f32.mrb[11].mxu0 }
 0x11b   : > { %v500_v47 = vmax.f32 %v481_v46, 0.0  ;;  %901 = vmatpush3.bf16.msra.mxu1 %v900_v43 }
 0x11c   : > { %902 = vmatprep.subr.bf16.mxu1 %v1116_v15 }
 0x11d   : > { %v903_v48 = vpack.c.bf16 %v501_v45, %v500_v47 }
 0x11f   : > { %904 = vmatpush3.bf16.msra.mxu1 %v903_v48 }
 0x122   : > { %885 = vmatmul.mubr.msk.f32.vlgmr.msra.gmra.mrb[0].mxu1 %vm509_vm3, %v502_v49 }
 0x1f5   : > { %v579_v51 = vpop.f32.mrb[0].mxu1 }
 0x1f6   : > { %v580_v52 = vadd.f32 %v579_v51, %v507_v50  ;;  %v886_v53 = vpop.f32.mrb[1].mxu1 }
 0x1f8   : > { %585 = vst [vmem:[%s307_s3 - $0x4] sm:$0x70] %v580_v52  ;;  %583 = vst [vmem:[%s274_s19] sm:$0x3] %v580_v52 }
 0x1f9   : > { %584 = vst [vmem:[%s281_s9 - $0x2] sm:$0xc] %v580_v52 }
 0x1fa   : > { %1000 = shalt.err (!%p997_p7)
}
 0x1fb   : > { %s1001_s3 = scalar_lea.hbm %s1308_s24, 32  ;;  %s1005_s18 = scalar_lea.hbm %s1395_s4, 128 }
 0x1fc   : > { %p1002_p9 = scmp.ne.s32.totalorder %s1308_s24, %s1001_s3  ;;  %p1006_p12 = scmp.lt.u32.totalorder %s1308_s24, %s1395_s4 }
 0x1fd   : > { %p1007_p13 = scmp.lt.u32.totalorder %s1005_s18, %s1001_s3  ;;  %p1009_p1 = scmp.lt.u32.totalorder %s1001_s3, %s1308_s24 }
 0x1fe   : > { %p1003_p10 = pnand %p1002_p9, %p1208_p3 }
 0x1ff   : > { %p1008_p0 = por %p1007_p13, %p1006_p12 }
 0x200   : > { %p1004_p11 = pneg %p1003_p10 }
 0x201   : > { %p1010_p2 = por %p1009_p1, %p1008_p0 }
 0x203   : > { %p1011_p4 = pnand %p1010_p2, %p1004_p11 }
 0x205   : > { %1014 = shalt.err (!%p1011_p4)
}
 0x206   : > { %905 = dma.vmem_to_hbm [thread:$0]  (%p1208_p3), %s1310_s20, 32, %s1308_s24, %s587_s1  }
 0x207   : > { %s592_s25 = scalar_lea.sflag [#allocation6], %s1295_s13  ;;  %s1015_s14 = scalar_lea.vmem %s1317_s12, 32 }
 0x208   : > { %p1016_p5 = scmp.ne.s32.totalorder %s1317_s12, %s1015_s14  ;;  %s1121_s2 = smov [#allocation5]  }
 0x209   : > { %s1019_s8 = sshll.u32 %s1121_s2, 4  ;;  %s1020_s8 = int_to_ptr.vmem [resolvable:$false] %s1019_s8 }
 0x20a   : > { %p1017_p6 = pnand %p1016_p5, %p1208_p3  ;;  %s1021_s29 = scalar_lea.vmem %s1020_s8, 64 }
 0x20b   : > { %p1022_p9 = scmp.lt.s32.totalorder %s1317_s12, %s1020_s8  ;;  %p1023_p10 = scmp.lt.s32.totalorder %s1021_s29, %s1015_s14 }
 0x20c   : > { %p1018_p7 = pneg %p1017_p6 }
 0x20d   : > { %p1024_p11 = por %p1023_p10, %p1022_p9 }
 0x20f   : > { %p1025_p12 = pnand %p1024_p11, %p1018_p7 }
 0x211   : > { %1028 = shalt.err (!%p1025_p12)
}
 0x212   : > { %s1029_s13 = scalar_lea.hbm %s1315_s0, 32  ;;  %s1033_s1 = scalar_lea.hbm %s1396_s5, 128 }
 0x213   : > { %p1030_p13 = scmp.ne.s32.totalorder %s1315_s0, %s1029_s13  ;;  %p1034_p2 = scmp.lt.u32.totalorder %s1315_s0, %s1396_s5 }
 0x214   : > { %p1035_p4 = scmp.lt.u32.totalorder %s1033_s1, %s1029_s13  ;;  %p1037_p6 = scmp.lt.u32.totalorder %s1029_s13, %s1315_s0 }
 0x215   : > { %p1031_p0 = pnand %p1030_p13, %p1208_p3 }
 0x216   : > { %p1036_p5 = por %p1035_p4, %p1034_p2 }
 0x217   : > { %p1032_p1 = pneg %p1031_p0 }
 0x218   : > { %p1038_p7 = por %p1037_p6, %p1036_p5 }
 0x21a   : > { %p1039_p9 = pnand %p1038_p7, %p1032_p1 }
 0x21c   : > { %1042 = shalt.err (!%p1039_p9)
}
 0x21d   : > { %906 = dma.vmem_to_hbm [thread:$0]  (%p1208_p3), %s1317_s12, 32, %s1315_s0, %s592_s25  }
 0x21e PF: > { %p916_p10 = scmp.ge.s32.totalorder %s1113_s28, 2  ;;  %s645_s16 = sand.u32 1, %s1085_s21  }
 0x21f   : > { %s646_s17 = scalar_lea.sflag [#allocation4], %s645_s16 }
 0x220   : > { %p910_p11 = pnand %p916_p10, %p1217_p8 }
 0x222   : > { %1076 = dma.done.wait (!%p910_p11), %s646_s17, 32  }
 0x223   : > { %1078 = vsyncadd (!%p910_p11), %s646_s17, 4294967264  ;;  %s655_s18 = scalar_lea.sflag [#allocation6], %s645_s16 }
 0x224   : > { %1080 = dma.done.wait (!%p910_p11), %s655_s18, 32  }
 0x225   : > { %1082 = vsyncadd (!%p910_p11), %s655_s18, 4294967264  ;;  %s23_s28 = sadd.s32 1, %s1113_s28   ;;  %s1410_s10 = sld [smem:[#allocation9_spill]] }
 0x226   : > { %p20_p12 = scmp.ge.s32.totalorder %s23_s28, 6   ;;  %s1411_s21 = smov %s1089_s22 }
 0x227   : > { %s1412_s22 = smov %s1093_s23  ;;  %s1413_s23 = smov %s1226_s15 }
 0x228   : > { %s1414_s24 = smov %s1105_s26  ;;  %s1415_s25 = smov %s1109_s27 }
 0x229   : > { %s1416_s26 = smov %s1419_s7  ;;  %22 = sbr.rel (!%p20_p12) target bundleno = 12 (0xc), region = 100 }
 0x22b   : > { %s1417_s27 = smov %s1410_s10 }
 0x230   :  { %671 = vsyncpa [#allocation4], 1 }
 0x231   :  { %673 = vsyncpa [#allocation4 + $0x1], 1 }
 0x232   :  { %674 = vsyncpa [#allocation6], 1 }
 0x233   :  { %676 = vsyncpa [#allocation6 + $0x1], 1 }

</bundles_post_ra>
